<compile_context>
chip_gen: v7x
topology: tpu7x:2x2x1
jax: 0.10.0
libtpu: 0.0.40
codegen_flags: <defaults>
</compile_context>

<pallas_src>
import jax
import jax.numpy as jnp
import numpy as np
from jax import lax
from jax.experimental import pallas as pl
from jax.experimental.pallas import tpu as pltpu


def _round_up(v, m):
    return (v + m - 1) // m * m


def _im2col_3x3(x):
    """(B, H, W, Cin) -> (B, H*W, 9*Cin) patches for a 3x3 same-conv."""
    B, H, W, Cin = x.shape
    xp = jnp.pad(x, ((0, 0), (1, 1), (1, 1), (0, 0)))
    taps = []
    for ky in range(3):
        for kx in range(3):
            taps.append(xp[:, ky:ky + H, kx:kx + W, :])
    patches = jnp.concatenate(taps, axis=-1)          # (B, H, W, 9*Cin)
    return patches.reshape(B, H * W, 9 * Cin)


def _fused_matmul_kernel(p_ref, w_ref, b_ref, o_ref):
    # p_ref: (1, TILE_M, K)        bf16   im2col patches
    # w_ref: (K, Cout_pad)         bf16   fused (reg|cls) weights
    # b_ref: (1, Cout_pad)         f32    fused bias
    # o_ref: (1, TILE_M, Cout_pad) f32
    acc = jnp.dot(p_ref[0], w_ref[...], preferred_element_type=jnp.float32)
    o_ref[0] = (acc + b_ref[...]).astype(o_ref.dtype)


def fused_conv3x3_pallas(x, w, b, *, tile_m_max=256, min_pixels=16):
    """3x3 conv, padding=1, stride=1, as one im2col matmul per M-tile.

    x: (B, H, W, Cin) float32 NHWC
    w: (3, 3, Cin, Cout)
    b: (Cout,)
    returns: (B, H*W, Cout) float32
    """
    B, H, W, Cin = x.shape
    Cout = w.shape[-1]
    M = H * W
    K = 9 * Cin

    patches = _im2col_3x3(x).astype(jnp.bfloat16)       # (B, M, K)
    w_flat = w.reshape(K, Cout).astype(jnp.bfloat16)    # (K, Cout)
    b_f32 = b.astype(jnp.float32)

    if M < min_pixels:
        # Tiny pyramid level: Pallas launch overhead dwarfs the compute.
        y = jnp.dot(patches, w_flat, preferred_element_type=jnp.float32)
        return y + b_f32[None, None, :]

    cout_pad = _round_up(Cout, 128)                     # lane-dense output
    tile_m = min(tile_m_max, _round_up(M, 8))           # multiple of 8
    m_pad = _round_up(M, tile_m)

    if m_pad != M:
        patches = jnp.pad(patches, ((0, 0), (0, m_pad - M), (0, 0)))
    if cout_pad != Cout:
        w_flat = jnp.pad(w_flat, ((0, 0), (0, cout_pad - Cout)))
        b_f32 = jnp.pad(b_f32, (0, cout_pad - Cout))
    b2 = b_f32.reshape(1, cout_pad)

    grid = (B, m_pad // tile_m)

    # Double-buffered block budget (patches + output tiles, weights, bias).
    vmem_bytes = (2 * tile_m * K * 2
                  + 2 * tile_m * cout_pad * 4
                  + 2 * K * cout_pad * 2
                  + 2 * cout_pad * 4)
    vmem_limit = int(min(max(vmem_bytes + (2 << 20), 32 << 20), 64 << 20))

    out = pl.pallas_call(
        _fused_matmul_kernel,
        out_shape=jax.ShapeDtypeStruct((B, m_pad, cout_pad), jnp.float32),
        grid_spec=pltpu.PrefetchScalarGridSpec(
            num_scalar_prefetch=0,
            grid=grid,
            in_specs=[
                pl.BlockSpec((1, tile_m, K), lambda bi, mi: (bi, mi, 0)),
                pl.BlockSpec((K, cout_pad), lambda bi, mi: (0, 0)),
                pl.BlockSpec((1, cout_pad), lambda bi, mi: (0, 0)),
            ],
            out_specs=pl.BlockSpec((1, tile_m, cout_pad),
                                   lambda bi, mi: (bi, mi, 0)),
        ),
        compiler_params=pltpu.CompilerParams(
            dimension_semantics=("parallel", "parallel"),
            vmem_limit_bytes=vmem_limit),
    )(patches, w_flat, b2)

    return out[:, :M, :Cout]


def _xavier_uniform(key, shape):
    # shape = (3, 3, Cin, Cout); fan_in = 9*Cin, fan_out = 9*Cout (matches
    # nn.init.xavier_uniform_ on a (Cout, Cin, 3, 3) conv weight).
    fan_in = shape[0] * shape[1] * shape[2]
    fan_out = shape[0] * shape[1] * shape[3]
    bound = float(np.sqrt(6.0 / (fan_in + fan_out)))
    return jax.random.uniform(key, shape, jnp.float32, -bound, bound)


class SSDHeadPallas:
    """JAX/Pallas port of SSDHead (nms=False branch)."""

    def __init__(self, key, num_classes=21,
                 anchor_num=(4, 6, 6, 6, 4, 4),
                 in_channels=(512, 1024, 512, 256, 256, 256),
                 prior=None):
        assert len(anchor_num) == 6
        self.num_classes = num_classes
        self.anchor_num = anchor_num
        self.in_channels = in_channels
        self.reg_params = []
        self.cls_params = []
        keys = jax.random.split(key, 2 * len(anchor_num))
        for i, a in enumerate(anchor_num):
            cin = in_channels[i]
            rw = _xavier_uniform(keys[2 * i], (3, 3, cin, a * 4))
            rb = jnp.zeros((a * 4,), jnp.float32)
            cw = _xavier_uniform(keys[2 * i + 1], (3, 3, cin, a * num_classes))
            cb = jnp.zeros((a * num_classes,), jnp.float32)
            self.reg_params.append((rw, rb))
            self.cls_params.append((cw, cb))
        self.anchor = prior
        # TODO(synk): Detect (top-k NMS post-processing, nms=True branch) has no
        # clean Pallas equivalent here; only the nms=False branch is implemented.

    def __call__(self, feats):
        bbox_preds = []
        cls_scores = []
        for i, feat in enumerate(feats):
            rw, rb = self.reg_params[i]
            cw, cb = self.cls_params[i]
            A = self.anchor_num[i]
            n_reg = A * 4
            # Fuse reg + cls heads into one conv (concat along Cout).
            w_fused = jnp.concatenate([rw, cw], axis=-1)
            b_fused = jnp.concatenate([rb, cb], axis=0)
            B = feat.shape[0]
            out = fused_conv3x3_pallas(feat, w_fused, b_fused)  # (B, M, A*(4+C))
            reg = out[..., :n_reg]
            cls = out[..., n_reg:]
            bbox_preds.append(reg.reshape(B, -1, 4))
            cls_scores.append(cls.reshape(B, -1, self.num_classes))
        return (jnp.concatenate(bbox_preds, axis=1),
                jnp.concatenate(cls_scores, axis=1),
                self.anchor)


def _conv3x3_ref(x, w, b):
    """Pure-JAX reference (bf16 inputs, f32 accumulation, same as the kernel)."""
    y = lax.conv_general_dilated(
        x.astype(jnp.bfloat16), w.astype(jnp.bfloat16),
        window_strides=(1, 1), padding="SAME",
        dimension_numbers=("NHWC", "HWIO", "NHWC"),
        preferred_element_type=jnp.float32)
    y = y + b[None, None, None, :].astype(jnp.float32)
    B, H, W, C = y.shape
    return y.reshape(B, H * W, C)


if __name__ == "__main__":
    key = jax.random.PRNGKey(0)

    # Small shapes consistent with the module structure (6 pyramid levels).
    B = 2
    num_classes = 21
    anchor_num = (4, 6, 6, 6, 4, 4)
    in_channels = (32, 64, 32, 16, 16, 16)
    spatial = (8, 4, 2, 1, 1, 1)

    total_anchors = sum(s * s * a for s, a in zip(spatial, anchor_num))

    k_prior, k_head, *k_feats = jax.random.split(key, 2 + len(anchor_num))
    prior = jax.random.uniform(k_prior, (total_anchors, 4), jnp.float32)

    feats = []
    for i in range(6):
        feats.append(jax.random.normal(
            k_feats[i], (B, spatial[i], spatial[i], in_channels[i]),
            jnp.float32))

    head = SSDHeadPallas(k_head, num_classes=num_classes,
                         anchor_num=anchor_num, in_channels=in_channels,
                         prior=prior)

    bbox_preds, cls_scores, anchor = head(feats)
    jax.block_until_ready((bbox_preds, cls_scores, anchor))

    # Cross-check the fused Pallas path against separate pure-JAX convs.
    ref_bbox, ref_cls = [], []
    for feat, (rw, rb), (cw, cb) in zip(feats, head.reg_params,
                                        head.cls_params):
        ref_bbox.append(_conv3x3_ref(feat, rw, rb).reshape(B, -1, 4))
        ref_cls.append(_conv3x3_ref(feat, cw, cb).reshape(B, -1, num_classes))
    ref_bbox = jnp.concatenate(ref_bbox, axis=1)
    ref_cls = jnp.concatenate(ref_cls, axis=1)

    assert bbox_preds.shape == (B, total_anchors, 4)
    assert cls_scores.shape == (B, total_anchors, num_classes)
    assert anchor.shape == (total_anchors, 4)
    np.testing.assert_allclose(np.asarray(bbox_preds), np.asarray(ref_bbox),
                               rtol=5e-3, atol=5e-3)
    np.testing.assert_allclose(np.asarray(cls_scores), np.asarray(ref_cls),
                               rtol=5e-3, atol=5e-3)

    print("KERNEL_OK")
</pallas_src>

<mosaic_0001>
module attributes {stable_mosaic.version = 11 : i64} {
  func.func @_fused_matmul_kernel(%arg0: i32, %arg1: i32, %arg2: memref<1x64x288xbf16, #tpu.memory_space<vmem>>, %arg3: memref<288x128xbf16, #tpu.memory_space<vmem>>, %arg4: memref<1x128xf32, #tpu.memory_space<vmem>>, %arg5: memref<1x64x128xf32, #tpu.memory_space<vmem>>) attributes {dimension_semantics = [#tpu.dimension_semantics<parallel>, #tpu.dimension_semantics<parallel>], iteration_bounds = array<i64: 2, 1>, scalar_prefetch = 0 : i64, scratch_operands = 0 : i64, tpu.core_type = #tpu.core_type<tc>, window_params = [{transform_indices = @transform_0, window_bounds = array<i64: 1, 64, 288>}, {pipeline_mode = #tpu.pipeline_mode<synchronous>, transform_indices = @transform_1, window_bounds = array<i64: 288, 128>}, {pipeline_mode = #tpu.pipeline_mode<synchronous>, transform_indices = @transform_2, window_bounds = array<i64: 1, 128>}, {transform_indices = @transform_3, window_bounds = array<i64: 1, 64, 128>}]} {
    %c0 = arith.constant 0 : index
    %c0_0 = arith.constant 0 : index
    %c0_1 = arith.constant 0 : index
    %0 = vector.load %arg2[%c0, %c0_0, %c0_1] : memref<1x64x288xbf16, #tpu.memory_space<vmem>>, vector<1x64x288xbf16>
    %1 = vector.shape_cast %0 : vector<1x64x288xbf16> to vector<64x288xbf16>
    %c0_2 = arith.constant 0 : index
    %c0_3 = arith.constant 0 : index
    %2 = vector.load %arg3[%c0_2, %c0_3] : memref<288x128xbf16, #tpu.memory_space<vmem>>, vector<288x128xbf16>
    %cst = arith.constant dense<0.000000e+00> : vector<64x128xf32>
    %3 = tpu.matmul %1, %2, %cst {dimension_numbers = #tpu.dot_dimension_numbers<[1], [0], [0], [1], [0, 0, 1, 1], [], []>} : vector<64x288xbf16>, vector<288x128xbf16>, vector<64x128xf32> -> vector<64x128xf32>
    %c0_4 = arith.constant 0 : index
    %c0_5 = arith.constant 0 : index
    %4 = vector.load %arg4[%c0_4, %c0_5] : memref<1x128xf32, #tpu.memory_space<vmem>>, vector<1x128xf32>
    %5 = vector.broadcast %4 : vector<1x128xf32> to vector<64x128xf32>
    %6 = arith.addf %3, %5 : vector<64x128xf32>
    %c0_6 = arith.constant 0 : index
    %c0_7 = arith.constant 0 : index
    %c0_8 = arith.constant 0 : index
    %7 = vector.load %arg5[%c0_6, %c0_7, %c0_8] : memref<1x64x128xf32, #tpu.memory_space<vmem>>, vector<1x64x128xf32>
    %8 = vector.shape_cast %7 : vector<1x64x128xf32> to vector<64x128xf32>
    %9 = vector.shape_cast %6 : vector<64x128xf32> to vector<1x64x128xf32>
    tpu.vector_store %arg5[%c0_6, %c0_7, %c0_8], %9 {strides = array<i32>} : memref<1x64x128xf32, #tpu.memory_space<vmem>>, vector<1x64x128xf32>,
    return
  }
  func.func @transform_0(%arg0: i32, %arg1: i32) -> (i32, i32, i32) {
    %c0_i32 = arith.constant 0 : i32
    %c0_i32_0 = arith.constant 0 : i32
    return %arg0, %arg1, %c0_i32 : i32, i32, i32
  }
  func.func @transform_1(%arg0: i32, %arg1: i32) -> (i32, i32) {
    %c0_i32 = arith.constant 0 : i32
    %c0_i32_0 = arith.constant 0 : i32
    %c0_i32_1 = arith.constant 0 : i32
    return %c0_i32, %c0_i32_0 : i32, i32
  }
  func.func @transform_2(%arg0: i32, %arg1: i32) -> (i32, i32) {
    %c0_i32 = arith.constant 0 : i32
    %c0_i32_0 = arith.constant 0 : i32
    %c0_i32_1 = arith.constant 0 : i32
    return %c0_i32, %c0_i32_0 : i32, i32
  }
  func.func @transform_3(%arg0: i32, %arg1: i32) -> (i32, i32, i32) {
    %c0_i32 = arith.constant 0 : i32
    %c0_i32_0 = arith.constant 0 : i32
    return %arg0, %arg1, %c0_i32 : i32, i32, i32
  }
}

</mosaic_0001>

<bundles_post_ra>
// kernel: tpu_custom_call.1
= control target key start
LH: loop header
LB: loop body
LE: loop exit
PB: predicated region body
PF: predicated region fallthrough
CT: control target
= control target key end

     0   :  { %8 = vsyncpa [#allocation3], 0  ;;  %s1378_s0 = inlined_call_operand.hbm [shape: bf16[2,64,288], index: 0, kind: input, shape index: {}]   ;;  %s1379_s1 = inlined_call_operand.hbm [shape: bf16[288,128], index: 1, kind: input, shape index: {}]   ;;  %s1380_s2 = inlined_call_operand.vmem [shape: f32[1,128], index: 2, kind: input, shape index: {}]   ;;  %s1381_s3 = inlined_call_operand.hbm [shape: f32[2,64,128], index: 3, kind: output, shape index: {}]  }
   0x1   :  { %10 = vsyncpa [#allocation3 + $0x1], 0 }
   0x2   :  { %11 = vsyncpa [#allocation6], 0 }
   0x3   :  { %12 = vsyncpa [#allocation4], 0 }
   0x4   :  { %14 = vsyncpa [#allocation4 + $0x1], 0  ;;  %s1132_s12 = smov 0   ;;  %s1134_s13 = smov 0  }
   0x5   :  { %s1136_s14 = smov 0   ;;  %s1138_s15 = smov 0  }
   0x6   :  { %s1140_s16 = smov 0   ;;  %s1142_s17 = smov 0  }
   0x7 LB: > { %s717_s18 = sadd.s32 4294967295, %s1101_s17   ;;  %s718_s19 = sadd.s32 4294967294, %s1101_s17   ;;  %s1101_s17 = sphi %s1142_s17, %s20_s17   ;;  %s1097_s16 = sphi %s1140_s16, %s1404_s16   ;;  %s1093_s15 = sphi %s1138_s15, %s1403_s15   ;;  %s1089_s14 = sphi %s1136_s14, %s1402_s14   ;;  %s1085_s13 = sphi %s1134_s13, %s1401_s13   ;;  %s1081_s12 = sphi %s1132_s12, %s1400_s12  }
   0x8   : > { %p54_p0 = scmp.ne.s32.totalorder %s1085_s13, %s1081_s12  ;;  %p1166_p1 = scmp.eq.s32.totalorder %s717_s18, 0 }
   0x9   : > { %p1170_p2 = scmp.eq.s32.totalorder %s717_s18, 1  ;;  %p128_p3 = scmp.eq.s32.totalorder %s718_s19, 1 }
   0xa   : > { %s1386_s20 = scalar_select %p1166_p1, 1, 0 }
   0xb   : > { %s1387_s21 = scalar_select %p1170_p2, 1, 0 }
   0xc   : > { %p1176_p4 = por %p1166_p1, %p54_p0  ;;  %p719_p5 = scmp.ge.s32.totalorder %s1101_s17, 1 }
   0xd   : > { %p1181_p6 = por %p128_p3, %p54_p0  ;;  %p135_p7 = scmp.lt.s32.totalorder %s1101_s17, 3 }
   0xe   : > { %s1388_s22 = scalar_select %p1176_p4, 1, 0 }
   0xf   : > { %s1389_s23 = scalar_select %p1181_p6, 1, 0 }
  0x10   : > { %p1186_p8 = pnand %p719_p5, %p135_p7  ;;  %s1103_s25 = smov [#allocation5]  }
  0x11   : > { %s147_s26 = sshll.u32 %s1103_s25, 4  ;;  %s32_s28 = sadd.s32 1, %s1097_s16  ;;  %s148_s26 = int_to_ptr.vmem [resolvable:$true] %s147_s26 }
  0x12   : > { %s1390_s24 = scalar_select %p1186_p8, 1, 0 }
  0x13   : > { %p852_p9 = pneg %p1186_p8  ;;  %s957_s4 = scalar_lea.hbm %s1379_s1, 2304 }
  0x14   : > { %p958_p12 = scmp.ne.s32.totalorder %s1379_s1, %s957_s4  ;;  %p964_p5 = scmp.lt.u32.totalorder %s957_s4, %s1379_s1 }
  0x15   : > { %p1195_p11 = pnand %p852_p9, %p1166_p1 }
  0x17   : > { %p959_p13 = pneg %p1195_p11 }
  0x19   : > { %p960_p0 = pnand %p959_p13, %p958_p12 }
  0x1b   : > { %p961_p3 = pneg %p960_p0 }
  0x1d   : > { %p966_p7 = pnand %p964_p5, %p961_p3 }
  0x1f   : > { %969 = shalt.err (!%p966_p7)
}
  0x20   : > { %s970_s9 = scalar_lea.vmem %s148_s26, 2304  ;;  %p978_p1 = scmp.lt.s32.totalorder %s148_s26, %s148_s26 }
  0x21   : > { %p971_p9 = scmp.ne.s32.totalorder %s148_s26, %s970_s9  ;;  %p979_p4 = scmp.lt.s32.totalorder %s970_s9, %s970_s9 }
  0x23   : > { %p973_p10 = pnand %p971_p9, %p959_p13  ;;  %p980_p8 = por %p979_p4, %p978_p1 }
  0x25   : > { %p974_p6 = pneg %p973_p10 }
  0x27   : > { %p981_p2 = pnand %p980_p8, %p974_p6 }
  0x29   : > { %984 = shalt.err (!%p981_p2)
}
  0x2a   : > { %s1104_s10 = smov 64   ;;  %s1105_s11 = smov 4  }
  0x2b   : > { %855 = dma.hbm_to_vmem [thread:$0]  (!%p1195_p11), %s1379_s1, 2304, %s148_s26, [#allocation6], %s1104_s10, %s1104_s10, %s1105_s11  }
  0x2c   : > { %p34_p1 = scmp.ge.s32.totalorder %s32_s28, 2  ;;  %s41_s25 = sadd.s32 1, %s1089_s14 }
  0x2d   : > { %p48_p2 = scmp.ne.s32.totalorder %s1089_s14, %s1085_s13  ;;  %p49_p4 = scmp.eq.s32.totalorder %s1101_s17, 0 }
  0x2e   : > { %s1406_s28 = smov (%p34_p1, %s32_s28), 0  ;;  %p1392_p8 = scmp.ne.s32.totalorder %s1387_s21, 0 }
  0x2f   : > { %p50_p6 = por %p49_p4, %p48_p2  ;;  %s36_s30 = ssub.s32 %s1097_s16, %s1406_s28 }
  0x30   : > { %p1224_p10 = por %p1392_p8, %p48_p2  ;;  %p865_p12 = scmp.lt.s32.totalorder %s1101_s17, 2 }
  0x31   : > { %p39_p13 = scmp.eq.s32.totalorder %s36_s30, 0  ;;  %s164_s27 = sand.u32 1, %s1089_s14  }
  0x32   : > { %s841_s4 = smul.u32 96, %s164_s27  ;;  %p1236_p11 = pnand %p865_p12, %p50_p6 }
  0x33   : > { %s1233_s5 = scalar_select %p39_p13, %s1089_s14, %s41_s25  }
  0x34   : > { %s842_s26 = smul.u32 1536, %s1097_s16  ;;  %s168_s6 = scalar_lea.vmem [#allocation2], %s841_s4 }
  0x35   : > { %s178_s7 = sshll.u32 %s168_s6, 4  ;;  %s1247_s11 = scalar_lea.sflag [#allocation3], %s164_s27  ;;  %s1245_s7 = int_to_ptr.vmem [resolvable:$true] %s178_s7 }
  0x36   : > { %s1243_s10 = scalar_lea.hbm %s1378_s0, %s842_s26  ;;  %p987_p3 = pneg %p1236_p11 }
  0x37   : > { %s985_s18 = scalar_lea.hbm %s1243_s10, 1536  ;;  %s990_s30 = scalar_lea.hbm %s1378_s0, 3072 }
  0x38   : > { %p986_p0 = scmp.ne.s32.totalorder %s1243_s10, %s985_s18  ;;  %p991_p9 = scmp.lt.u32.totalorder %s1243_s10, %s1378_s0 }
  0x39   : > { %p992_p1 = scmp.lt.u32.totalorder %s990_s30, %s985_s18  ;;  %p994_p4 = scmp.lt.u32.totalorder %s985_s18, %s1243_s10 }
  0x3a   : > { %p988_p5 = pnand %p987_p3, %p986_p0 }
  0x3b   : > { %p993_p2 = por %p992_p1, %p991_p9 }
  0x3c   : > { %p989_p7 = pneg %p988_p5 }
  0x3d   : > { %p995_p6 = por %p994_p4, %p993_p2 }
  0x3f   : > { %p996_p8 = pnand %p995_p6, %p989_p7 }
  0x41   : > { %999 = shalt.err (!%p996_p8)
}
  0x42   : > { %s1000_s27 = scalar_lea.vmem %s1245_s7, 1536  ;;  %s1106_s6 = smov [#allocation2]  }
  0x43   : > { %p1001_p12 = scmp.ne.s32.totalorder %s1245_s7, %s1000_s27  ;;  %s1005_s9 = sshll.u32 %s1106_s6, 4  ;;  %s1006_s9 = int_to_ptr.vmem [resolvable:$false] %s1005_s9 }
  0x44   : > { %s1007_s21 = scalar_lea.vmem %s1006_s9, 3072  ;;  %p1008_p5 = scmp.lt.s32.totalorder %s1245_s7, %s1006_s9 }
  0x45   : > { %p1003_p13 = pnand %p1001_p12, %p987_p3  ;;  %p1009_p9 = scmp.lt.s32.totalorder %s1007_s21, %s1000_s27 }
  0x47   : > { %p1004_p0 = pneg %p1003_p13  ;;  %p1010_p1 = por %p1009_p9, %p1008_p5 }
  0x49   : > { %p1011_p2 = pnand %p1010_p1, %p1004_p0 }
  0x4b   : > { %1014 = shalt.err (!%p1011_p2)
}
  0x4c   : > { %s1107_s18 = smov 192   ;;  %s1108_s19 = smov 12  }
  0x4d   : > { %859 = dma.hbm_to_vmem [thread:$0]  (!%p1236_p11), %s1243_s10, 1536, %s1245_s7, %s1247_s11, %s1107_s18, %s1107_s18, %s1108_s19  }
  0x4e   : > { %p1395_p3 = scmp.ne.s32.totalorder %s1390_s24, 0 }
  0x4f   : > { %s1278_s25 = sand.u32 (!%p1395_p3), 1, %s1085_s13   ;;  %p1396_p7 = scmp.ne.s32.totalorder (!%p1395_p3), %s1388_s22, 0 }
  0x50   : > { %190 = sbr.rel (%p1395_p3) target bundleno = 376 (0x178), region = 32  ;;  %s193_s4 = scalar_lea.sflag (!%p1395_p3), [#allocation3], %s1278_s25 }
  0x51   : > { %s843_s30 = smul.u32 (!%p1395_p3), 96, %s1278_s25 }
  0x53   : > { %s1282_s26 = scalar_lea.vmem (!%p1395_p3), [#allocation2], %s843_s30 }
  0x57   : > { %1068 = dma.done.wait (%p1396_p7), %s193_s4, 1536  }
  0x58   : > { %1070 = vsyncadd (%p1396_p7), %s193_s4, 4294965760  ;;  %p1397_p11 = scmp.ne.s32.totalorder %s1386_s20, 0 }
  0x5a   : > { %1072 = dma.done.wait (%p1397_p11), [#allocation6], 2304  }
  0x5b   : > { %1074 = vsyncadd (%p1397_p11), [#allocation6], 4294964992  ;;  %v923_v0 = vld [vmem:[#allocation5 + $0x40] sm:$0xff]   ;;  %v925_v2 = vld [vmem:[#allocation5 + $0x48] sm:$0xff]   ;;  %vm453_vm0 = vcmask 261120   ;;  %s725_s24 = sshll.u32 %s1278_s25, 6 }
  0x5c   : > { %v924_v1 = vld [vmem:[#allocation5] sm:$0xff]   ;;  %767 = vmatprep.subr.bf16.mxu0 %v923_v0  ;;  %825 = vmatprep.subr.bf16.mxu1 %v923_v0  ;;  %v926_v3 = vld [vmem:[#allocation5 + $0x8] sm:$0xff]   ;;  %v927_v4 = vld [vmem:[#allocation5 + $0x50] sm:$0xff]   ;;  %s1312_s7 = scalar_lea.vmem [#allocation7], %s725_s24  ;;  %s766_s8 = sshll.u32 %s1093_s15, 10 }
  0x5d   : > { %768 = vmatpush3.bf16.msra.mxu0 %v924_v1  ;;  %833 = vmatpush3.bf16.msra.mxu1 %v924_v1  ;;  %v928_v5 = vld [vmem:[#allocation5 + $0x10] sm:$0xff]   ;;  %v929_v6 = vld [vmem:[#allocation5 + $0x58] sm:$0xff]   ;;  %v931_v8 = vld [vmem:[#allocation5 + $0x60] sm:$0xff]   ;;  %s620_s10 = sshll.u32 %s1312_s7, 4  ;;  %s1325_s6 = scalar_lea.hbm %s1381_s3, %s766_s8  ;;  %s1327_s10 = int_to_ptr.vmem [resolvable:$true] %s620_s10 }
  0x5e   : > { %769 = vmatprep.subr.bf16.mxu0 %v925_v2  ;;  %826 = vmatprep.subr.bf16.mxu1 %v925_v2  ;;  %v930_v7 = vld [vmem:[#allocation5 + $0x18] sm:$0xff]   ;;  %v932_v9 = vld [vmem:[#allocation5 + $0x20] sm:$0xff]   ;;  %v933_v10 = vld [vmem:[#allocation5 + $0x68] sm:$0xff]   ;;  %s605_s9 = scalar_lea.sflag [#allocation4], %s1278_s25  ;;  %s1015_s21 = scalar_lea.vmem %s1327_s10, 1024 }
  0x5f   : > { %v941_v11 = vld [vmem:[%s1282_s26 + $0x4] ss:$12 sps:$4 sm:$0xff]   ;;  %v944_v12 = vld [vmem:[%s1282_s26 + $0x4c] ss:$12 sps:$4 sm:$0xff]   ;;  %v942_v20 = vld [vmem:[%s1282_s26 + $0x48] ss:$12 sps:$4 sm:$0xff]   ;;  %p1016_p4 = scmp.ne.s32.totalorder %s1327_s10, %s1015_s21 }
  0x60   : > { %v934_v13 = vld [vmem:[#allocation5 + $0x28] sm:$0xff]   ;;  %v935_v14 = vld [vmem:[#allocation5 + $0x70] sm:$0xff]   ;;  %498 = vmatprep.mubr.bf16.mxu0 %v941_v11  ;;  %522 = vmatprep.mubr.bf16.mxu1 %v944_v12  ;;  %v937_v16 = vld [vmem:[#allocation5 + $0x78] sm:$0xff]   ;;  %s1109_s15 = smov [#allocation7]  }
  0x61   : > { %770 = vmatpush3.bf16.msra.mxu0 %v926_v3  ;;  %834 = vmatpush3.bf16.msra.mxu1 %v926_v3  ;;  %v936_v15 = vld [vmem:[#allocation5 + $0x30] sm:$0xff]   ;;  %v938_v17 = vld [vmem:[#allocation5 + $0x38] sm:$0xff]   ;;  %v945_v18 = vld [vmem:[#allocation5 + $0x80] sm:$0xff]   ;;  %p1017_p6 = pnand %p1016_p4, %p1224_p10  ;;  %s1019_s18 = sshll.u32 %s1109_s15, 4  ;;  %s1020_s18 = int_to_ptr.vmem [resolvable:$false] %s1019_s18 }
  0x62   : > { %771 = vmatprep.subr.bf16.mxu0 %v927_v4  ;;  %827 = vmatprep.subr.bf16.mxu1 %v927_v4  ;;  %v939_v19 = vld [vmem:[%s1282_s26] ss:$12 sps:$4 sm:$0xff]   ;;  %v947_v21 = vld [vmem:[%s1282_s26 + $0x1c] ss:$12 sps:$4 sm:$0xff]   ;;  %v950_v24 = vld [vmem:[%s1282_s26 + $0x18] ss:$12 sps:$4 sm:$0xff]   ;;  %p1022_p12 = scmp.lt.s32.totalorder %s1327_s10, %s1020_s18 }
  0x63   : > { %v946_v22 = vld [vmem:[#allocation5 + $0x88] sm:$0xff]   ;;  %v952_v26 = vld [vmem:[%s1282_s26 + $0x34] ss:$12 sps:$4 sm:$0xff]   ;;  %v954_v27 = vld [vmem:[%s1282_s26 + $0x38] ss:$12 sps:$4 sm:$0xff]   ;;  %p1018_p8 = pneg %p1017_p6  ;;  %s1021_s19 = scalar_lea.vmem %s1020_s18, 2048 }
  0x64   : > { %v949_v23 = vld [vmem:[%s1282_s26 + $0x8] ss:$12 sps:$4 sm:$0xff]   ;;  %v951_v25 = vld [vmem:[%s1282_s26 + $0x20] ss:$12 sps:$4 sm:$0xff]   ;;  %v955_v28 = vld [vmem:[%s1282_s26 + $0x30] ss:$12 sps:$4 sm:$0xff]   ;;  %p1023_p13 = scmp.lt.s32.totalorder %s1021_s19, %s1015_s21 }
  0x65   : > { %772 = vmatpush3.bf16.msra.mxu0 %v928_v5  ;;  %835 = vmatpush3.bf16.msra.mxu1 %v928_v5  ;;  %v956_v29 = vld [vmem:[%s1282_s26 + $0x50] ss:$12 sps:$4 sm:$0xff]   ;;  %v726_v42 = vld [vmem:[%s1380_s2] ss:$0 sm:$0xff] }
  0x66   : > { %773 = vmatprep.subr.bf16.mxu0 %v929_v6  ;;  %828 = vmatprep.subr.bf16.mxu1 %v929_v6  ;;  %p1024_p0 = por %p1023_p13, %p1022_p12 }
  0x68   : > { %p1025_p5 = pnand %p1024_p0, %p1018_p8 }
  0x69   : > { %774 = vmatpush3.bf16.msra.mxu0 %v930_v7  ;;  %836 = vmatpush3.bf16.msra.mxu1 %v930_v7 }
  0x6a   : > { %775 = vmatprep.subr.bf16.mxu0 %v931_v8  ;;  %829 = vmatprep.subr.bf16.mxu1 %v931_v8 }
  0x6d   : > { %776 = vmatpush3.bf16.msra.mxu0 %v932_v9  ;;  %837 = vmatpush3.bf16.msra.mxu1 %v932_v9 }
  0x6e   : > { %777 = vmatprep.subr.bf16.mxu0 %v933_v10  ;;  %830 = vmatprep.subr.bf16.mxu1 %v933_v10 }
  0x71   : > { %778 = vmatpush3.bf16.msra.mxu0 %v934_v13  ;;  %838 = vmatpush3.bf16.msra.mxu1 %v934_v13 }
  0x72   : > { %779 = vmatprep.subr.bf16.mxu0 %v935_v14  ;;  %831 = vmatprep.subr.bf16.mxu1 %v935_v14 }
  0x75   : > { %780 = vmatpush3.bf16.msra.mxu0 %v936_v15  ;;  %839 = vmatpush3.bf16.msra.mxu1 %v936_v15 }
  0x76   : > { %781 = vmatprep.subr.bf16.mxu0 %v937_v16  ;;  %832 = vmatprep.subr.bf16.mxu1 %v937_v16 }
  0x79   : > { %782 = vmatpush3.bf16.msra.mxu0 %v938_v17  ;;  %840 = vmatpush3.bf16.msra.mxu1 %v938_v17 }
  0x7a   : > { %813 = vmatprep.subr.bf16.mxu1 %v945_v18 }
  0x7c   : > { %499 = vmatmul.mubr.bf16.vlgmr.msra.gmra.mrb[0].mxu0 %v939_v19  ;;  %523 = vmatmul.mubr.bf16.vlgmr.msra.gmra.mrb[0].mxu1 %v942_v20 }
  0x7d   : > { %814 = vmatpush3.bf16.msra.mxu1 %v945_v18  ;;  %506 = vmatprep.mubr.bf16.mxu0 %v947_v21 }
  0x7e   : > { %815 = vmatprep.subr.bf16.mxu1 %v946_v22  ;;  %817 = vmatprep.mubr.msk.bf16.mxu1 %vm453_vm0, %v949_v23 }
  0x81   : > { %816 = vmatpush3.bf16.msra.mxu1 %v946_v22 }
  0x84   : > { %507 = vmatmul.mubr.bf16.gmra.mrb[4].mxu0 %v950_v24  ;;  %818 = vmatmul.mubr.msk.bf16.vlgmr.msra.gmra.mrb[4].mxu1 %vm453_vm0, %v951_v25 }
  0x85   : > { %514 = vmatprep.mubr.bf16.mxu0 %v952_v26  ;;  %821 = vmatprep.mubr.msk.bf16.mxu1 %vm453_vm0, %v954_v27 }
  0x8c   : > { %515 = vmatmul.mubr.bf16.gmra.mrb[8].mxu0 %v955_v28  ;;  %822 = vmatmul.mubr.msk.bf16.gmra.mrb[8].mxu1 %vm453_vm0, %v956_v29 }
 0x14f   : > { %v783_v30 = vpop.f32.mrb[0].mxu0  ;;  %v801_v31 = vpop.f32.mrb[0].mxu1 }
 0x150   : > { %v784_v32 = vpop.f32.mrb[1].mxu0  ;;  %v802_v33 = vpop.f32.mrb[1].mxu1 }
 0x151   : > { %v785_v34 = vadd.f32 %v784_v32, %v783_v30  ;;  %v786_v35 = vpop.f32.mrb[2].mxu0  ;;  %v803_v36 = vadd.f32 %v802_v33, %v801_v31  ;;  %v804_v37 = vpop.f32.mrb[2].mxu1 }
 0x152   : > { %v787_v38 = vpop.f32.mrb[3].mxu0  ;;  %v805_v39 = vpop.f32.mrb[3].mxu1 }
 0x153   : > { %v788_v40 = vadd.f32 %v787_v38, %v786_v35  ;;  %v806_v41 = vadd.f32 %v805_v39, %v804_v37  ;;  %v501_v45 = vadd.f32 %v785_v34, %v726_v42  ;;  %v525_v60 = vadd.f32 %v803_v36, %v726_v42 }
 0x155   : > { %v504_v52 = vadd.f32 %v788_v40, %v726_v42  ;;  %v528_v3 = vadd.f32 %v806_v41, %v726_v42 }
 0x157   : > { %v789_v43 = vpop.f32.mrb[4].mxu0  ;;  %v819_v44 = vpop.f32.mrb[4].mxu1 }
 0x158   : > { %v790_v46 = vpop.f32.mrb[5].mxu0  ;;  %v565_v47 = vpop.f32.mrb[5].mxu1 }
 0x159   : > { %v791_v48 = vadd.f32 %v790_v46, %v789_v43  ;;  %v566_v49 = vadd.f32 %v565_v47, %v501_v45  ;;  %v792_v50 = vpop.f32.mrb[6].mxu0  ;;  %v820_v51 = vpop.f32.mrb[6].mxu1 }
 0x15a   : > { %v793_v53 = vpop.f32.mrb[7].mxu0  ;;  %v568_v54 = vpop.f32.mrb[7].mxu1 }
 0x15b   : > { %v509_v55 = vadd.f32 %v791_v48, %v726_v42  ;;  %596 = vst [vmem:[%s1312_s7] sm:$0xff] %v566_v49  ;;  %v794_v56 = vadd.f32 %v793_v53, %v792_v50  ;;  %v569_v57 = vadd.f32 %v568_v54, %v504_v52 }
 0x15d   : > { %v574_v58 = vadd.f32 %v819_v44, %v509_v55  ;;  %v512_v59 = vadd.f32 %v794_v56, %v726_v42  ;;  %597 = vst [vmem:[%s1312_s7 + $0x8] sm:$0xff] %v569_v57 }
 0x15f   : > { %598 = vst [vmem:[%s1312_s7 + $0x10] sm:$0xff] %v574_v58  ;;  %v577_v61 = vadd.f32 %v820_v51, %v512_v59  ;;  %v795_v62 = vpop.f32.mrb[8].mxu0  ;;  %v823_v63 = vpop.f32.mrb[8].mxu1 }
 0x160   : > { %v590_v0 = vadd.f32 %v823_v63, %v525_v60  ;;  %v796_v1 = vpop.f32.mrb[9].mxu0  ;;  %v581_v2 = vpop.f32.mrb[9].mxu1 }
 0x161   : > { %599 = vst [vmem:[%s1312_s7 + $0x18] sm:$0xff] %v577_v61  ;;  %v797_v4 = vadd.f32 %v796_v1, %v795_v62  ;;  %v798_v5 = vpop.f32.mrb[10].mxu0  ;;  %v824_v6 = vpop.f32.mrb[10].mxu1 }
 0x162   : > { %602 = vst [vmem:[%s1312_s7 + $0x30] sm:$0xff] %v590_v0  ;;  %v593_v7 = vadd.f32 %v824_v6, %v528_v3  ;;  %v799_v8 = vpop.f32.mrb[11].mxu0  ;;  %v584_v9 = vpop.f32.mrb[11].mxu1 }
 0x163   : > { %v517_v10 = vadd.f32 %v797_v4, %v726_v42  ;;  %v800_v11 = vadd.f32 %v799_v8, %v798_v5 }
 0x164   : > { %603 = vst [vmem:[%s1312_s7 + $0x38] sm:$0xff] %v593_v7 }
 0x165   : > { %v582_v12 = vadd.f32 %v581_v2, %v517_v10  ;;  %v520_v13 = vadd.f32 %v800_v11, %v726_v42 }
 0x167   : > { %600 = vst [vmem:[%s1312_s7 + $0x20] sm:$0xff] %v582_v12  ;;  %v585_v14 = vadd.f32 %v584_v9, %v520_v13 }
 0x169   : > { %601 = vst [vmem:[%s1312_s7 + $0x28] sm:$0xff] %v585_v14 }
 0x16a   : > { %1028 = shalt.err (!%p1025_p5)
}
 0x16b   : > { %s1029_s30 = scalar_lea.hbm %s1325_s6, 1024  ;;  %s1033_s20 = scalar_lea.hbm %s1381_s3, 2048 }
 0x16c   : > { %p1030_p9 = scmp.ne.s32.totalorder %s1325_s6, %s1029_s30  ;;  %p1034_p3 = scmp.lt.u32.totalorder %s1325_s6, %s1381_s3 }
 0x16d   : > { %p1035_p7 = scmp.lt.u32.totalorder %s1033_s20, %s1029_s30  ;;  %p1037_p4 = scmp.lt.u32.totalorder %s1029_s30, %s1325_s6 }
 0x16e   : > { %p1031_p1 = pnand %p1030_p9, %p1224_p10 }
 0x16f   : > { %p1036_p11 = por %p1035_p7, %p1034_p3 }
 0x170   : > { %p1032_p2 = pneg %p1031_p1 }
 0x171   : > { %p1038_p6 = por %p1037_p4, %p1036_p11 }
 0x173   : > { %p1039_p8 = pnand %p1038_p6, %p1032_p2 }
 0x175   : > { %1042 = shalt.err (!%p1039_p8)
}
 0x176   : > { %s1110_s7 = smov 128   ;;  %s1111_s8 = smov 8  }
 0x177   : > { %850 = dma.vmem_to_hbm [thread:$0]  (%p1224_p10), %s1327_s10, 1024, %s1325_s6, %s605_s9, %s1110_s7, %s1110_s7, %s1111_s8  }
 0x178 PF: > { %s635_s11 = sand.u32 1, %s1081_s12   ;;  %p1398_p12 = scmp.ne.s32.totalorder %s1389_s23, 0 }
 0x179   : > { %p1399_p13 = scmp.ge.s32.totalorder %s1101_s17, 2  ;;  %s636_s27 = scalar_lea.sflag [#allocation4], %s635_s11 }
 0x17b   : > { %p861_p0 = pnand %p1399_p13, %p1398_p12 }
 0x17d   : > { %1076 = dma.done.wait (!%p861_p0), %s636_s27, 1024  }
 0x17e   : > { %1078 = vsyncadd (!%p861_p0), %s636_s27, 4294966272  ;;  %s20_s17 = sadd.s32 1, %s1101_s17   ;;  %s1400_s12 = smov %s1085_s13 }
 0x17f   : > { %p17_p5 = scmp.ge.s32.totalorder %s20_s17, 4   ;;  %s1401_s13 = smov %s1089_s14 }
 0x180   : > { %s1402_s14 = smov %s1233_s5  ;;  %s1403_s15 = smov %s1097_s16 }
 0x181   : > { %s1404_s16 = smov %s1406_s28  ;;  %19 = sbr.rel (!%p17_p5) target bundleno = 7 (0x7), region = 81 }
 0x188   :  { %641 = vsyncpa [#allocation3], 1 }
 0x189   :  { %643 = vsyncpa [#allocation3 + $0x1], 1 }
 0x18a   :  { %644 = vsyncpa [#allocation6], 1 }
 0x18b   :  { %645 = vsyncpa [#allocation4], 1 }
 0x18c   :  { %647 = vsyncpa [#allocation4 + $0x1], 1 }

</bundles_post_ra>
